<compile_context>
chip_gen: v7x
topology: tpu7x:2x2x1
jax: 0.10.0
libtpu: 0.0.40
codegen_flags: <defaults>
</compile_context>

<pallas_src>
import functools

import jax
import jax.numpy as jnp
from jax.experimental import pallas as pl
from jax.experimental.pallas import tpu as pltpu

_LANES = 128
_SUBLANES = 8


def _contrastive_loss_kernel(margin, dist_ref, y_ref, loss_ref):
    # Compute in f32 regardless of storage dtype (bf16/int8 inputs stay narrow
    # in HBM; the upcast is free under the DMA-bound roofline and avoids the
    # missing bf16 VPU path on v5e).
    d = dist_ref[...].astype(jnp.float32)
    y = y_ref[...].astype(jnp.float32)
    dist_sq = d * d
    clamped = jnp.maximum(margin - dist_sq, 0.0)
    loss = y * dist_sq + (1.0 - y) * clamped
    loss_ref[...] = loss.astype(loss_ref.dtype)


def _sublane_granule(*dtypes):
    """Sublane alignment for block rows given the packed dtypes involved."""
    g = _SUBLANES
    for dt in dtypes:
        itemsize = jnp.dtype(dt).itemsize
        g = max(g, _SUBLANES * max(1, 4 // itemsize))
    return g


def _ref_contrastive_loss(dist, y, margin):
    d = dist.astype(jnp.float32)
    yy = y.astype(jnp.float32)
    dist_sq = d * d
    clamped = jnp.maximum(jnp.float32(margin) - dist_sq, 0.0)
    return yy * dist_sq + (1.0 - yy) * clamped


def contrastive_loss(dist, y, margin=1.0, block_rows=2048, min_pallas_elements=16384):
    """Elementwise contrastive loss (forward only, no reduction).

    Args:
      dist:   [N] pairwise distances (any float dtype).
      y:      [N] labels in {0, 1} (float/int/bool).
      margin: scalar margin (static Python number).
    Returns:
      loss:   [N], same dtype as `dist`.
    """
    if y.ndim != 1:
        raise ValueError(f"y must be 1-D, got shape {y.shape}")  # check_type_forward
    if dist.ndim != 1 or dist.shape[0] != y.shape[0]:
        raise ValueError(f"dist/y shape mismatch: {dist.shape} vs {y.shape}")

    n = dist.shape[0]
    out_dtype = dist.dtype
    margin = float(margin)

    # Small-N fast path: a single fused XLA elementwise op is already at
    # roofline; pallas_call launch + pad/reshape/slice would dominate.
    if n < min_pallas_elements:
        return _ref_contrastive_loss(dist, y, margin).astype(out_dtype)

    # Lane-dense 2-D layout. Only pad up to the next multiple of 128 lanes
    # (free when n is already a multiple of 128); reshape is metadata-only.
    n_rows = pl.cdiv(n, _LANES)
    pad = n_rows * _LANES - n
    d2 = dist if pad == 0 else jnp.pad(dist, (0, pad))
    y2 = y if pad == 0 else jnp.pad(y, (0, pad))
    d2 = d2.reshape(n_rows, _LANES)
    y2 = y2.reshape(n_rows, _LANES)

    granule = _sublane_granule(dist.dtype, y.dtype, out_dtype)

    if n_rows <= granule:
        # Tiny input: one block equal to the full array dims (always legal).
        block_rows = n_rows
    else:
        # Keep block_rows granule-aligned.
        block_rows = max(granule, -(-block_rows // granule) * granule)
        if n_rows <= block_rows:
            # Split into ~2 blocks so both v7x TensorCores get work; the
            # (possibly partial) final block is masked by Pallas.
            half = -(-n_rows // 2)
            block_rows = max(granule, -(-half // granule) * granule)

    grid = (pl.cdiv(n_rows, block_rows),)

    out = pl.pallas_call(
        functools.partial(_contrastive_loss_kernel, margin),
        out_shape=jax.ShapeDtypeStruct((n_rows, _LANES), out_dtype),
        grid=grid,
        in_specs=[
            pl.BlockSpec((block_rows, _LANES), lambda i: (i, 0)),
            pl.BlockSpec((block_rows, _LANES), lambda i: (i, 0)),
        ],
        out_specs=pl.BlockSpec((block_rows, _LANES), lambda i: (i, 0)),
        compiler_params=pltpu.CompilerParams(
            dimension_semantics=("parallel",),
        ),
    )(d2, y2)

    out_flat = out.reshape(-1)
    return out_flat if pad == 0 else out_flat[:n]


if __name__ == "__main__":
    margin = 1.0
    key = jax.random.PRNGKey(0)
    k_d, k_y, k_d2, k_y2, k_d3, k_y3 = jax.random.split(key, 6)

    # Case 1: small N, not a multiple of 128 -> exercises lane padding and the
    # full-dim single-block path. Force the Pallas path.
    n1 = 300
    dist1 = jax.random.uniform(k_d, (n1,), dtype=jnp.float32, minval=0.0, maxval=2.0)
    y1 = jax.random.bernoulli(k_y, p=0.5, shape=(n1,)).astype(jnp.float32)
    loss1 = contrastive_loss(dist1, y1, margin=margin, min_pallas_elements=0)
    jax.block_until_ready(loss1)
    ref1 = _ref_contrastive_loss(dist1, y1, margin)
    assert loss1.shape == (n1,)
    assert jnp.allclose(loss1, ref1, atol=1e-6, rtol=1e-6), float(
        jnp.max(jnp.abs(loss1 - ref1))
    )

    # Case 2: N multiple of 128 (no padding), split into 2 grid blocks.
    n2 = 4096
    dist2 = jax.random.uniform(k_d2, (n2,), dtype=jnp.float32, minval=0.0, maxval=2.0)
    y2 = jax.random.bernoulli(k_y2, p=0.5, shape=(n2,)).astype(jnp.float32)
    loss2 = contrastive_loss(dist2, y2, margin=margin, min_pallas_elements=0)
    jax.block_until_ready(loss2)
    ref2 = _ref_contrastive_loss(dist2, y2, margin)
    assert loss2.shape == (n2,)
    assert jnp.allclose(loss2, ref2, atol=1e-6, rtol=1e-6), float(
        jnp.max(jnp.abs(loss2 - ref2))
    )

    # Case 3: narrow HBM dtypes (bf16 dist, int8 labels), f32 compute in-kernel,
    # bf16 output written directly.
    n3 = 8192
    dist3 = jax.random.uniform(
        k_d3, (n3,), dtype=jnp.float32, minval=0.0, maxval=2.0
    ).astype(jnp.bfloat16)
    y3 = jax.random.bernoulli(k_y3, p=0.5, shape=(n3,)).astype(jnp.int8)
    loss3 = contrastive_loss(dist3, y3, margin=margin, min_pallas_elements=0)
    jax.block_until_ready(loss3)
    assert loss3.dtype == jnp.bfloat16 and loss3.shape == (n3,)
    ref3 = _ref_contrastive_loss(dist3, y3, margin)
    assert jnp.allclose(loss3.astype(jnp.float32), ref3, atol=3e-2, rtol=3e-2), float(
        jnp.max(jnp.abs(loss3.astype(jnp.float32) - ref3))
    )

    # Case 4: default small-N fast path (no Pallas) still matches.
    loss4 = contrastive_loss(dist1, y1, margin=margin)
    jax.block_until_ready(loss4)
    assert jnp.allclose(loss4, ref1, atol=1e-6, rtol=1e-6)

    print("KERNEL_OK")
</pallas_src>

<mosaic_0001>
module attributes {stable_mosaic.version = 11 : i64} {
  func.func @_contrastive_loss_kernel(%arg0: i32, %arg1: memref<3x128xf32, #tpu.memory_space<vmem>>, %arg2: memref<3x128xf32, #tpu.memory_space<vmem>>, %arg3: memref<3x128xf32, #tpu.memory_space<vmem>>) attributes {dimension_semantics = [#tpu.dimension_semantics<parallel>], iteration_bounds = array<i64: 1>, scalar_prefetch = 0 : i64, scratch_operands = 0 : i64, tpu.core_type = #tpu.core_type<tc>, window_params = [{transform_indices = @transform_0, window_bounds = array<i64: 3, 128>}, {transform_indices = @transform_1, window_bounds = array<i64: 3, 128>}, {transform_indices = @transform_2, window_bounds = array<i64: 3, 128>}]} {
    %c0 = arith.constant 0 : index
    %c0_0 = arith.constant 0 : index
    %0 = vector.load %arg1[%c0, %c0_0] : memref<3x128xf32, #tpu.memory_space<vmem>>, vector<3x128xf32>
    %c0_1 = arith.constant 0 : index
    %c0_2 = arith.constant 0 : index
    %1 = vector.load %arg2[%c0_1, %c0_2] : memref<3x128xf32, #tpu.memory_space<vmem>>, vector<3x128xf32>
    %2 = arith.mulf %0, %0 : vector<3x128xf32>
    %cst = arith.constant 1.000000e+00 : f32
    %3 = vector.broadcast %cst : f32 to vector<3x128xf32>
    %4 = arith.subf %3, %2 : vector<3x128xf32>
    %cst_3 = arith.constant 0.000000e+00 : f32
    %5 = vector.broadcast %cst_3 : f32 to vector<3x128xf32>
    %6 = arith.maximumf %4, %5 : vector<3x128xf32>
    %7 = arith.mulf %1, %2 : vector<3x128xf32>
    %cst_4 = arith.constant 1.000000e+00 : f32
    %8 = vector.broadcast %cst_4 : f32 to vector<3x128xf32>
    %9 = arith.subf %8, %1 : vector<3x128xf32>
    %10 = arith.mulf %9, %6 : vector<3x128xf32>
    %11 = arith.addf %7, %10 : vector<3x128xf32>
    %c0_5 = arith.constant 0 : index
    %c0_6 = arith.constant 0 : index
    %12 = vector.load %arg3[%c0_5, %c0_6] : memref<3x128xf32, #tpu.memory_space<vmem>>, vector<3x128xf32>
    tpu.vector_store %arg3[%c0_5, %c0_6], %11 {strides = array<i32>} : memref<3x128xf32, #tpu.memory_space<vmem>>, vector<3x128xf32>,
    return
  }
  func.func @transform_0(%arg0: i32) -> (i32, i32) {
    %c0_i32 = arith.constant 0 : i32
    %c0_i32_0 = arith.constant 0 : i32
    return %arg0, %c0_i32 : i32, i32
  }
  func.func @transform_1(%arg0: i32) -> (i32, i32) {
    %c0_i32 = arith.constant 0 : i32
    %c0_i32_0 = arith.constant 0 : i32
    return %arg0, %c0_i32 : i32, i32
  }
  func.func @transform_2(%arg0: i32) -> (i32, i32) {
    %c0_i32 = arith.constant 0 : i32
    %c0_i32_0 = arith.constant 0 : i32
    return %arg0, %c0_i32 : i32, i32
  }
}

</mosaic_0001>

<bundles_post_ra>
// kernel: tpu_custom_call.1
= control target key start
LH: loop header
LB: loop body
LE: loop exit
PB: predicated region body
PF: predicated region fallthrough
CT: control target
= control target key end

     0   :  { %7 = vsyncpa [#allocation3], 0  ;;  %s191_s0 = inlined_call_operand.hbm [shape: f32[3,128], index: 0, kind: input, shape index: {}]   ;;  %s192_s1 = inlined_call_operand.hbm [shape: f32[3,128], index: 1, kind: input, shape index: {}]   ;;  %s193_s2 = inlined_call_operand.hbm [shape: f32[3,128], index: 2, kind: output, shape index: {}]  }
   0x1   :  { %8 = vsyncpa [#allocation6], 0 }
   0x2   :  { %9 = vsyncpa [#allocation4], 0  ;;  %s137_s9 = smov [#allocation2]   ;;  %s138_s11 = smov [#allocation5]  }
   0x3   :  { %s16_s10 = sshll.u32 %s137_s9, 4  ;;  %s26_s12 = sshll.u32 %s138_s11, 4  ;;  %s17_s10 = int_to_ptr.vmem [resolvable:$true] %s16_s10  ;;  %s27_s12 = int_to_ptr.vmem [resolvable:$true] %s26_s12 }
   0x4   :  { %s65_s15 = scalar_lea.hbm %s191_s0, 64 }
   0x5   :  { %p66_p0 = scmp.ne.s32.totalorder %s191_s0, %s65_s15  ;;  %p69_p1 = scmp.lt.u32.totalorder %s65_s15, %s191_s0 }
   0x7   :  { %p71_p2 = pnand %p69_p1, %p66_p0 }
   0x9   :  { %74 = shalt.err (!%p71_p2)
}
   0xa   :  { %s75_s20 = scalar_lea.vmem %s17_s10, 64  ;;  %p80_p4 = scmp.lt.s32.totalorder %s17_s10, %s17_s10 }
   0xb   :  { %p76_p3 = scmp.ne.s32.totalorder %s17_s10, %s75_s20  ;;  %p81_p5 = scmp.lt.s32.totalorder %s75_s20, %s75_s20 }
   0xd   :  { %p82_p6 = por %p81_p5, %p80_p4 }
   0xf   :  { %p83_p7 = pnand %p82_p6, %p76_p3 }
  0x11   :  { %86 = shalt.err (!%p83_p7)
}
  0x12   :  { %19 = dma.hbm_to_vmem [thread:$0]  %s191_s0, 64, %s17_s10, [#allocation3]  }
  0x13   :  { %s87_s25 = scalar_lea.hbm %s192_s1, 64 }
  0x14   :  { %p88_p8 = scmp.ne.s32.totalorder %s192_s1, %s87_s25  ;;  %p91_p9 = scmp.lt.u32.totalorder %s87_s25, %s192_s1 }
  0x16   :  { %p93_p10 = pnand %p91_p9, %p88_p8 }
  0x18   :  { %96 = shalt.err (!%p93_p10)
}
  0x19   :  { %s97_s30 = scalar_lea.vmem %s27_s12, 64  ;;  %p102_p12 = scmp.lt.s32.totalorder %s27_s12, %s27_s12 }
  0x1a   :  { %p98_p11 = scmp.ne.s32.totalorder %s27_s12, %s97_s30  ;;  %p103_p13 = scmp.lt.s32.totalorder %s97_s30, %s97_s30 }
  0x1c   :  { %p104_p0 = por %p103_p13, %p102_p12 }
  0x1e   :  { %p105_p1 = pnand %p104_p0, %p98_p11 }
  0x20   :  { %108 = shalt.err (!%p105_p1)
}
  0x21   :  { %29 = dma.hbm_to_vmem [thread:$0]  %s192_s1, 64, %s27_s12, [#allocation6]  }
  0x22   :  { %131 = dma.done.wait [#allocation3], 64  }
  0x23   :  { %132 = vsyncadd [#allocation3], 4294967232 }
  0x24   :  { %133 = dma.done.wait [#allocation6], 64  }
  0x25   :  { %134 = vsyncadd [#allocation6], 4294967232  ;;  %v36_v0 = vld [vmem:[#allocation2] sm:$0x7]  ;;  %v37_v1 = vld [vmem:[#allocation5] sm:$0x7] }
  0x26   :  { %v38_v2 = vmul.f32 %v36_v0, %v36_v0  ;;  %v42_v4 = vsub.f32 1.0, %v37_v1  ;;  %s139_s4 = smov [#allocation7]  }
  0x27   :  { %s52_s5 = sshll.u32 %s139_s4, 4  ;;  %s53_s5 = int_to_ptr.vmem [resolvable:$true] %s52_s5 }
  0x28   :  { %v39_v3 = vsub.f32 1.0, %v38_v2  ;;  %v41_v6 = vmul.f32 %v38_v2, %v37_v1  ;;  %s109_s6 = scalar_lea.vmem %s53_s5, 64  ;;  %p114_p3 = scmp.lt.s32.totalorder %s53_s5, %s53_s5 }
  0x29   :  { %p110_p2 = scmp.ne.s32.totalorder %s53_s5, %s109_s6  ;;  %p115_p4 = scmp.lt.s32.totalorder %s109_s6, %s109_s6 }
  0x2a   :  { %v40_v5 = vmax.f32 %v39_v3, 0.0 }
  0x2b   :  { %p116_p5 = por %p115_p4, %p114_p3 }
  0x2c   :  { %v43_v7 = vmul.f32 %v42_v4, %v40_v5 }
  0x2d   :  { %p117_p6 = pnand %p116_p5, %p110_p2 }
  0x2e   :  { %v44_v8 = vadd.f32 %v43_v7, %v41_v6 }
  0x30   :  { %45 = vst [vmem:[#allocation7] sm:$0x7] %v44_v8 }
  0x31   :  { %120 = shalt.err (!%p117_p6)
}
  0x32   :  { %s121_s8 = scalar_lea.hbm %s193_s2, 64 }
  0x33   :  { %p122_p7 = scmp.ne.s32.totalorder %s193_s2, %s121_s8  ;;  %p125_p8 = scmp.lt.u32.totalorder %s121_s8, %s193_s2 }
  0x35   :  { %p127_p9 = pnand %p125_p8, %p122_p7 }
  0x37   :  { %130 = shalt.err (!%p127_p9)
}
  0x38   :  { %55 = dma.vmem_to_hbm [thread:$0]  %s53_s5, 64, %s193_s2, [#allocation4]  }
  0x39   :  { %135 = dma.done.wait [#allocation4], 64  }
  0x3a   :  { %136 = vsyncadd [#allocation4], 4294967232 }
  0x3b   :  { %59 = vsyncpa [#allocation3], 1 }
  0x3c   :  { %60 = vsyncpa [#allocation6], 1 }
  0x3d   :  { %61 = vsyncpa [#allocation4], 1 }

</bundles_post_ra>
